<compile_context>
chip_gen: v7x
topology: tpu7x:2x2x1
jax: 0.10.0
libtpu: 0.0.40
codegen_flags: <defaults>
</compile_context>

<pallas_src>
import jax
import jax.numpy as jnp
import numpy as np
from jax.experimental import pallas as pl
from jax.experimental.pallas import tpu as pltpu

# Set True on TPU v7x (2 TensorCores/chip) to shard the row axis of the hidden
# kernel across TensorCores.  "parallel" is the portable default for v5e/v6e.
_USE_CORE_PARALLEL = False

# Explicit scoped-VMEM budget; comfortably fits the tile plans below on
# v5e (16 MiB default scoped), v6e (32 MiB) and v7x (64 MiB physical).
_VMEM_LIMIT_BYTES = 32 * 1024 * 1024


# ---------------------------------------------------------------------------
# Helpers
# ---------------------------------------------------------------------------
def _round_up(n, m):
    return ((n + m - 1) // m) * m


def _pick_tile(dim, pref, align):
    """Largest aligned tile <= pref dividing dim.  Callers pad dim to `align`
    before tiling, so this never silently falls back to a whole-array block."""
    if dim <= pref:
        return dim                      # block == full dim is always legal
    t = max((pref // align) * align, align)
    while t > align and dim % t:
        t -= align
    return t if dim % t == 0 else align


# ---------------------------------------------------------------------------
# Pallas kernel 1: PLM body on the mask rows.
#   x:(M,H) bf16   W1:(H,H) bf16   b1:(1,H) f32  ->  h:(M,H) bf16
#   h = tanh(x @ W1 + b1), tiled (M, N, K) grid, f32 VMEM accumulator.
# ---------------------------------------------------------------------------
def _hidden_kernel(x_ref, w1_ref, b1_ref, o_ref, acc_ref):
    k = pl.program_id(2)

    @pl.when(k == 0)
    def _():
        acc_ref[...] = jnp.zeros_like(acc_ref)

    acc_ref[...] += jnp.dot(
        x_ref[...], w1_ref[...], preferred_element_type=jnp.float32
    )

    @pl.when(k == pl.num_programs(2) - 1)
    def _():
        o_ref[...] = jnp.tanh(acc_ref[...] + b1_ref[...]).astype(o_ref.dtype)


def plm_hidden(x, w1, b1, *, tm_pref=512, tn_pref=1024, tk_pref=512,
               out_dtype=jnp.bfloat16):
    M, H = x.shape
    sub = 16 if x.dtype == jnp.bfloat16 else 8

    # Pad to TPU-friendly granularities (never request a whole-array block).
    Mp = _round_up(M, sub)
    Hp = H if H <= min(tn_pref, tk_pref) else _round_up(H, 128)
    if (Mp, Hp) != (M, H):
        x = jnp.pad(x, ((0, Mp - M), (0, Hp - H)))
        w1 = jnp.pad(w1, ((0, Hp - H), (0, Hp - H)))
        b1 = jnp.pad(b1, ((0, 0), (0, Hp - H)))

    tm = _pick_tile(Mp, tm_pref, sub)
    tn = _pick_tile(Hp, tn_pref, 128)
    tk = _pick_tile(Hp, tk_pref, 128)
    grid = (Mp // tm, Hp // tn, Hp // tk)

    row_sem = pltpu.CORE_PARALLEL if _USE_CORE_PARALLEL else "parallel"
    bytes_acc = ((Mp * Hp + Hp * Hp) * x.dtype.itemsize
                 + Hp * 4
                 + Mp * Hp * jnp.dtype(out_dtype).itemsize)
    cost = pl.CostEstimate(flops=2 * Mp * Hp * Hp,
                           transcendentals=Mp * Hp,
                           bytes_accessed=bytes_acc)

    out = pl.pallas_call(
        _hidden_kernel,
        out_shape=jax.ShapeDtypeStruct((Mp, Hp), out_dtype),
        grid_spec=pltpu.PrefetchScalarGridSpec(
            num_scalar_prefetch=0,
            grid=grid,
            in_specs=[
                pl.BlockSpec((tm, tk), lambda i, j, k: (i, k)),   # x tile (bf16)
                pl.BlockSpec((tk, tn), lambda i, j, k: (k, j)),   # W1 tile (bf16)
                pl.BlockSpec((1, tn), lambda i, j, k: (0, j)),    # bias tile (f32)
            ],
            out_specs=pl.BlockSpec((tm, tn), lambda i, j, k: (i, j)),
            scratch_shapes=[pltpu.VMEM((tm, tn), jnp.float32)],
        ),
        compiler_params=pltpu.CompilerParams(
            dimension_semantics=(row_sem, "parallel", "arbitrary"),
            vmem_limit_bytes=_VMEM_LIMIT_BYTES,
        ),
        cost_estimate=cost,
    )(x, w1, b1)

    return out[:M, :H] if (Mp, Hp) != (M, H) else out


# ---------------------------------------------------------------------------
# Pallas kernel 2: fused LM head + verbalizer on the B mask rows.
#   h:(B,H) bf16   Weff:(H,Cp) bf16   beff:(1,Cp) f32  ->  (B,Cp) f32
#   K-tiled over H with an f32 accumulator (guards v5e scoped-VMEM at large H);
#   Cp is 128-padded so stores are lane-dense.
# ---------------------------------------------------------------------------
def _head_verbalizer_kernel(h_ref, w_ref, b_ref, o_ref, acc_ref):
    k = pl.program_id(1)

    @pl.when(k == 0)
    def _():
        acc_ref[...] = jnp.zeros_like(acc_ref)

    acc_ref[...] += jnp.dot(
        h_ref[...], w_ref[...], preferred_element_type=jnp.float32
    )

    @pl.when(k == pl.num_programs(1) - 1)
    def _():
        o_ref[...] = acc_ref[...] + b_ref[...]


def head_verbalizer(h_mask, w_eff, b_eff, *, tb_pref=256, tk_pref=512):
    B, H = h_mask.shape
    Cp = w_eff.shape[1]
    sub = 16 if h_mask.dtype == jnp.bfloat16 else 8

    Bp = _round_up(B, sub)
    Hp = H if H <= tk_pref else _round_up(H, 128)
    if (Bp, Hp) != (B, H):
        h_mask = jnp.pad(h_mask, ((0, Bp - B), (0, Hp - H)))
        w_eff = jnp.pad(w_eff, ((0, Hp - H), (0, 0)))

    tb = _pick_tile(Bp, tb_pref, sub)
    tk = _pick_tile(Hp, tk_pref, 128)
    grid = (Bp // tb, Hp // tk)

    out = pl.pallas_call(
        _head_verbalizer_kernel,
        out_shape=jax.ShapeDtypeStruct((Bp, Cp), jnp.float32),
        grid_spec=pltpu.PrefetchScalarGridSpec(
            num_scalar_prefetch=0,
            grid=grid,
            in_specs=[
                pl.BlockSpec((tb, tk), lambda i, k: (i, k)),   # mask-row hidden tile
                pl.BlockSpec((tk, Cp), lambda i, k: (k, 0)),   # folded head+verbalizer
                pl.BlockSpec((1, Cp), lambda i, k: (0, 0)),    # folded bias
            ],
            out_specs=pl.BlockSpec((tb, Cp), lambda i, k: (i, 0)),
            scratch_shapes=[pltpu.VMEM((tb, Cp), jnp.float32)],
        ),
        compiler_params=pltpu.CompilerParams(
            dimension_semantics=("parallel", "arbitrary"),
            vmem_limit_bytes=_VMEM_LIMIT_BYTES,
        ),
    )(h_mask, w_eff, b_eff)

    return out[:B] if Bp != B else out


# ---------------------------------------------------------------------------
# One-time parameter folding:  Weff = Wlm @ P,  beff = blm @ P, 128-lane padded.
# Weff is cast to bf16 for the MXU; the bias stays f32 (added post-accumulation).
# ---------------------------------------------------------------------------
def fold_head_and_verbalizer(wlm, blm, verb_proj, lane=128):
    C = verb_proj.shape[1]
    w_eff = (wlm @ verb_proj).astype(jnp.float32)        # (H, C)
    b_eff = (blm @ verb_proj).astype(jnp.float32)        # (1, C)
    Cp = _round_up(max(C, 1), lane)
    w_eff = jnp.pad(w_eff, ((0, 0), (0, Cp - C))).astype(jnp.bfloat16)
    b_eff = jnp.pad(b_eff, ((0, 0), (0, Cp - C)))
    return w_eff, b_eff


# ---------------------------------------------------------------------------
# Full forward: PromptForClassification.forward(batch) -> label_words_logits (B, C)
# ---------------------------------------------------------------------------
def prompt_for_classification_forward(params, batch):
    input_ids = batch["input_ids"]        # (B, S) int32
    loss_ids = batch["loss_ids"]          # (B, S) int32, exactly one 1 per row
    B, S = input_ids.shape
    C = params["verb_proj"].shape[1]

    # extract_at_mask hoisted to the front: the concretized PLM body is strictly
    # row-wise and only the mask rows are consumed downstream, so we embed and
    # transform only the B mask positions (factor-S FLOP/byte saving).
    # TODO(synk): drop this hoist if the synthetic body is replaced by a real
    # attention stack with cross-token mixing; then run plm_hidden on all B*S rows.
    mask_pos = jnp.argmax(loss_ids, axis=1)                                   # (B,)
    ids_at_mask = jnp.take_along_axis(input_ids, mask_pos[:, None], 1)[:, 0]  # (B,)
    x_mask = (jnp.take(params["tok_emb"], ids_at_mask, axis=0)
              + jnp.take(params["pos_emb"], mask_pos, axis=0))                # (B, H)
    x_mask = x_mask.astype(jnp.bfloat16)
    # TODO(synk): an in-Pallas scalar-prefetch row gather (pl.Element index_map)
    # could fuse this gather into the kernel; at (B, H) it is metadata-level cheap.

    # PLM body on the mask rows (Pallas, bf16 MXU, f32 accumulate).
    h_mask = plm_hidden(x_mask, params["w1_bf16"], params["b1"])              # (B, H)

    # Fused LM head + verbalizer (Pallas), lane-dense padded output.
    out_padded = head_verbalizer(h_mask, params["w_eff"], params["b_eff"])    # (B, Cp)
    return out_padded[:, :C]                                                  # (B, C)


# ---------------------------------------------------------------------------
# Pure-JAX reference in the ORIGINAL op order (PLM on all tokens, LM head on all
# tokens, extract_at_mask, then verbalizer projection) to validate the folding,
# the early extraction and the bf16 cast.
# ---------------------------------------------------------------------------
def reference_forward(params, batch):
    input_ids = batch["input_ids"]
    loss_ids = batch["loss_ids"]
    B, S = input_ids.shape
    x = jnp.take(params["tok_emb"], input_ids, axis=0) + params["pos_emb"][None, :S, :]
    h = jnp.tanh(x @ params["w1"] + params["b1"][0])
    logits = h @ params["wlm"] + params["blm"][0]                # (B, S, V)
    mask_pos = jnp.argmax(loss_ids, axis=1)
    at_mask = logits[jnp.arange(B), mask_pos]                    # (B, V)
    return at_mask @ params["verb_proj"]                         # (B, C)


if __name__ == "__main__":
    # Small shapes consistent with the forward pass.
    B, S, H, V, C, L = 2, 8, 32, 128, 2, 3   # batch, seq, hidden, vocab, classes, label-words/class

    key = jax.random.PRNGKey(0)
    k_tok, k_pos, k_w1, k_b1, k_wlm, k_blm, k_ids = jax.random.split(key, 7)

    params = {
        "tok_emb": jax.random.normal(k_tok, (V, H), jnp.float32) * 0.02,
        "pos_emb": jax.random.normal(k_pos, (S, H), jnp.float32) * 0.02,
        "w1": jax.random.normal(k_w1, (H, H), jnp.float32) * (1.0 / np.sqrt(H)),
        "b1": jax.random.normal(k_b1, (1, H), jnp.float32) * 0.01,
        "wlm": jax.random.normal(k_wlm, (H, V), jnp.float32) * (1.0 / np.sqrt(H)),
        "blm": jax.random.normal(k_blm, (1, V), jnp.float32) * 0.01,
    }

    # Verbalizer: C classes, L label words each (distinct vocab ids), mean aggregation.
    label_word_ids = np.arange(C * L, dtype=np.int32).reshape(C, L) + 5
    proj = np.zeros((V, C), dtype=np.float32)
    for c in range(C):
        for v in label_word_ids[c]:
            proj[v, c] = 1.0 / L
    params["verb_proj"] = jnp.asarray(proj)

    # One-time folds / casts (done once, outside the forward).
    w_eff, b_eff = fold_head_and_verbalizer(
        params["wlm"], params["blm"], params["verb_proj"]
    )
    params["w_eff"] = w_eff                                   # (H, Cp) bf16
    params["b_eff"] = b_eff                                   # (1, Cp) f32
    params["w1_bf16"] = params["w1"].astype(jnp.bfloat16)     # bf16 MXU weight

    # Batch: input ids and loss_ids with exactly one <mask> position per row.
    input_ids = jax.random.randint(k_ids, (B, S), 0, V, dtype=jnp.int32)
    loss_ids = np.zeros((B, S), dtype=np.int32)
    loss_ids[0, 3] = 1
    loss_ids[1, 5] = 1
    # Debug-path contract check: exactly one mask per row (argmax assumption).
    assert np.all(loss_ids.sum(axis=1) == 1), "expected exactly one <mask> per row"
    batch = {"input_ids": input_ids, "loss_ids": jnp.asarray(loss_ids)}

    out = prompt_for_classification_forward(params, batch)
    out = jax.block_until_ready(out)

    ref = jax.block_until_ready(reference_forward(params, batch))
    # bf16 matmul inputs -> classification-grade tolerance vs. the f32 reference.
    np.testing.assert_allclose(np.asarray(out), np.asarray(ref), rtol=5e-2, atol=2e-3)
    assert out.shape == (B, C)

    print("KERNEL_OK")
</pallas_src>

<mosaic_0001>
module attributes {stable_mosaic.version = 11 : i64} {
  func.func @_hidden_kernel(%arg0: i32, %arg1: i32, %arg2: i32, %arg3: memref<16x32xbf16, #tpu.memory_space<vmem>>, %arg4: memref<32x32xbf16, #tpu.memory_space<vmem>>, %arg5: memref<1x32xf32, #tpu.memory_space<vmem>>, %arg6: memref<16x32xbf16, #tpu.memory_space<vmem>>, %arg7: memref<16x32xf32, #tpu.memory_space<vmem>>) attributes {dimension_semantics = [#tpu.dimension_semantics<parallel>, #tpu.dimension_semantics<parallel>, #tpu.dimension_semantics<arbitrary>], iteration_bounds = array<i64: 1, 1, 1>, scalar_prefetch = 0 : i64, scratch_operands = 1 : i64, tpu.core_type = #tpu.core_type<tc>, window_params = [{transform_indices = @transform_0, window_bounds = array<i64: 16, 32>}, {transform_indices = @transform_1, window_bounds = array<i64: 32, 32>}, {transform_indices = @transform_2, window_bounds = array<i64: 1, 32>}, {transform_indices = @transform_3, window_bounds = array<i64: 16, 32>}]} {
    %c0_i32 = arith.constant 0 : i32
    %0 = arith.cmpi eq, %arg2, %c0_i32 : i32
    %1 = arith.extui %0 : i1 to i32
    %c0_i32_0 = arith.constant 0 : i32
    %2 = arith.cmpi ne, %1, %c0_i32_0 : i32
    scf.if %2 {
      %cst_10 = arith.constant 0.000000e+00 : f32
      %12 = vector.broadcast %cst_10 : f32 to vector<16x32xf32>
      %c0_11 = arith.constant 0 : index
      %c0_12 = arith.constant 0 : index
      %13 = vector.load %arg7[%c0_11, %c0_12] : memref<16x32xf32, #tpu.memory_space<vmem>>, vector<16x32xf32>
      tpu.vector_store %arg7[%c0_11, %c0_12], %12 {strides = array<i32>} : memref<16x32xf32, #tpu.memory_space<vmem>>, vector<16x32xf32>,
    } else {
    }
    %c0 = arith.constant 0 : index
    %c0_1 = arith.constant 0 : index
    %3 = vector.load %arg7[%c0, %c0_1] : memref<16x32xf32, #tpu.memory_space<vmem>>, vector<16x32xf32>
    %c0_2 = arith.constant 0 : index
    %c0_3 = arith.constant 0 : index
    %4 = vector.load %arg3[%c0_2, %c0_3] : memref<16x32xbf16, #tpu.memory_space<vmem>>, vector<16x32xbf16>
    %c0_4 = arith.constant 0 : index
    %c0_5 = arith.constant 0 : index
    %5 = vector.load %arg4[%c0_4, %c0_5] : memref<32x32xbf16, #tpu.memory_space<vmem>>, vector<32x32xbf16>
    %cst = arith.constant dense<0.000000e+00> : vector<16x32xf32>
    %6 = tpu.matmul %4, %5, %cst {dimension_numbers = #tpu.dot_dimension_numbers<[1], [0], [0], [1], [0, 0, 1, 1], [], []>} : vector<16x32xbf16>, vector<32x32xbf16>, vector<16x32xf32> -> vector<16x32xf32>
    %7 = arith.addf %3, %6 : vector<16x32xf32>
    %c0_6 = arith.constant 0 : index
    %c0_7 = arith.constant 0 : index
    %8 = vector.load %arg7[%c0_6, %c0_7] : memref<16x32xf32, #tpu.memory_space<vmem>>, vector<16x32xf32>
    tpu.vector_store %arg7[%c0_6, %c0_7], %7 {strides = array<i32>} : memref<16x32xf32, #tpu.memory_space<vmem>>, vector<16x32xf32>,
    %c0_i32_8 = arith.constant 0 : i32
    %9 = arith.cmpi eq, %arg2, %c0_i32_8 : i32
    %10 = arith.extui %9 : i1 to i32
    %c0_i32_9 = arith.constant 0 : i32
    %11 = arith.cmpi ne, %10, %c0_i32_9 : i32
    scf.if %11 {
      %c0_10 = arith.constant 0 : index
      %c0_11 = arith.constant 0 : index
      %12 = vector.load %arg7[%c0_10, %c0_11] : memref<16x32xf32, #tpu.memory_space<vmem>>, vector<16x32xf32>
      %c0_12 = arith.constant 0 : index
      %c0_13 = arith.constant 0 : index
      %13 = vector.load %arg5[%c0_12, %c0_13] : memref<1x32xf32, #tpu.memory_space<vmem>>, vector<1x32xf32>
      %14 = vector.broadcast %13 : vector<1x32xf32> to vector<16x32xf32>
      %15 = arith.addf %12, %14 : vector<16x32xf32>
      %16 = math.tanh %15 : vector<16x32xf32>
      %17 = arith.truncf %16 : vector<16x32xf32> to vector<16x32xbf16>
      %c0_14 = arith.constant 0 : index
      %c0_15 = arith.constant 0 : index
      %18 = vector.load %arg6[%c0_14, %c0_15] : memref<16x32xbf16, #tpu.memory_space<vmem>>, vector<16x32xbf16>
      tpu.vector_store %arg6[%c0_14, %c0_15], %17 {strides = array<i32>} : memref<16x32xbf16, #tpu.memory_space<vmem>>, vector<16x32xbf16>,
    } else {
    }
    return
  }
  func.func @transform_0(%arg0: i32, %arg1: i32, %arg2: i32) -> (i32, i32) {
    %c0_i32 = arith.constant 0 : i32
    return %arg0, %arg2 : i32, i32
  }
  func.func @transform_1(%arg0: i32, %arg1: i32, %arg2: i32) -> (i32, i32) {
    %c0_i32 = arith.constant 0 : i32
    return %arg2, %arg1 : i32, i32
  }
  func.func @transform_2(%arg0: i32, %arg1: i32, %arg2: i32) -> (i32, i32) {
    %c0_i32 = arith.constant 0 : i32
    %c0_i32_0 = arith.constant 0 : i32
    return %c0_i32, %arg1 : i32, i32
  }
  func.func @transform_3(%arg0: i32, %arg1: i32, %arg2: i32) -> (i32, i32) {
    %c0_i32 = arith.constant 0 : i32
    return %arg0, %arg1 : i32, i32
  }
}

</mosaic_0001>

<bundles_post_ra>
// kernel: tpu_custom_call.1
= control target key start
LH: loop header
LB: loop body
LE: loop exit
PB: predicated region body
PF: predicated region fallthrough
CT: control target
= control target key end

     0   :  { %8 = vsyncpa [#allocation4], 0  ;;  %s356_s0 = inlined_call_operand.hbm [shape: bf16[16,32], index: 0, kind: input, shape index: {}]   ;;  %s357_s1 = inlined_call_operand.hbm [shape: bf16[32,32], index: 1, kind: input, shape index: {}]   ;;  %s358_s2 = inlined_call_operand.vmem [shape: f32[1,32], index: 2, kind: input, shape index: {}]   ;;  %s359_s3 = inlined_call_operand.hbm [shape: bf16[16,32], index: 3, kind: output, shape index: {}]  }
   0x1   :  { %9 = vsyncpa [#allocation7], 0 }
   0x2   :  { %10 = vsyncpa [#allocation5], 0  ;;  %s276_s12 = smov [#allocation3]   ;;  %s204_s16 = scalar_lea.hbm %s356_s0, 128 }
   0x3   :  { %s16_s13 = sshll.u32 %s276_s12, 4  ;;  %p205_p0 = scmp.ne.s32.totalorder %s356_s0, %s204_s16  ;;  %s17_s13 = int_to_ptr.vmem [resolvable:$true] %s16_s13 }
   0x4   :  { %p208_p1 = scmp.lt.u32.totalorder %s204_s16, %s356_s0 }
   0x6   :  { %p210_p2 = pnand %p208_p1, %p205_p0 }
   0x8   :  { %213 = shalt.err (!%p210_p2)
}
   0x9   :  { %s214_s21 = scalar_lea.vmem %s17_s13, 128  ;;  %p219_p4 = scmp.lt.s32.totalorder %s17_s13, %s17_s13 }
   0xa   :  { %p215_p3 = scmp.ne.s32.totalorder %s17_s13, %s214_s21  ;;  %p220_p5 = scmp.lt.s32.totalorder %s214_s21, %s214_s21 }
   0xc   :  { %p221_p6 = por %p220_p5, %p219_p4 }
   0xe   :  { %p222_p7 = pnand %p221_p6, %p215_p3 }
  0x10   :  { %225 = shalt.err (!%p222_p7)
}
  0x11   :  { %s277_s22 = smov 64   ;;  %s278_s23 = smov 4  }
  0x12   :  { %22 = dma.hbm_to_vmem [thread:$0]  %s356_s0, 128, %s17_s13, [#allocation4], %s277_s22, %s277_s22, %s278_s23  }
  0x13   :  { %s279_s26 = smov [#allocation6]   ;;  %s226_s30 = scalar_lea.hbm %s357_s1, 256 }
  0x14   :  { %s28_s27 = sshll.u32 %s279_s26, 4  ;;  %p227_p8 = scmp.ne.s32.totalorder %s357_s1, %s226_s30  ;;  %s29_s27 = int_to_ptr.vmem [resolvable:$true] %s28_s27 }
  0x15   :  { %p230_p9 = scmp.lt.u32.totalorder %s226_s30, %s357_s1 }
  0x17   :  { %p232_p10 = pnand %p230_p9, %p227_p8 }
  0x19   :  { %235 = shalt.err (!%p232_p10)
}
  0x1a   :  { %s236_s8 = scalar_lea.vmem %s29_s27, 256  ;;  %p241_p12 = scmp.lt.s32.totalorder %s29_s27, %s29_s27 }
  0x1b   :  { %p237_p11 = scmp.ne.s32.totalorder %s29_s27, %s236_s8  ;;  %p242_p13 = scmp.lt.s32.totalorder %s236_s8, %s236_s8 }
  0x1d   :  { %p243_p0 = por %p242_p13, %p241_p12 }
  0x1f   :  { %p244_p1 = pnand %p243_p0, %p237_p11 }
  0x21   :  { %247 = shalt.err (!%p244_p1)
}
  0x22   :  { %34 = dma.hbm_to_vmem [thread:$0]  %s357_s1, 256, %s29_s27, [#allocation7], %s277_s22, %s277_s22, %s278_s23  }
  0x23   :  { %270 = dma.done.wait [#allocation4], 128  }
  0x24   :  { %271 = vsyncadd [#allocation4], 4294967168 }
  0x25   :  { %272 = dma.done.wait [#allocation7], 256  }
  0x26   :  { %273 = vsyncadd [#allocation7], 4294967040  ;;  %vm48_vm0 = vcmask 261120   ;;  %v280_v0 = vmov 0.0   ;;  %vm281_vm1 = vmmov 0   ;;  %v197_v1 = vld [vmem:[#allocation6] sm:$0xff]  }
  0x27   :  { %182 = vmatprep.subr.bf16.mxu0 %v280_v0  ;;  %186 = vmatprep.mubr.msk.bf16.mxu0 %vm281_vm1, %v280_v0  ;;  %49 = vst.msk [vmem:[#allocation2] sm:$0xff] %vm48_vm0, %v280_v0  ;;  %50 = vst.msk [vmem:[#allocation2 + $0x8] sm:$0xff] %vm48_vm0, %v280_v0  ;;  %v198_v2 = vld [vmem:[#allocation6 + $0x8] sm:$0xff]   ;;  %v199_v3 = vld [vmem:[#allocation3] sm:$0xff]   ;;  %vm149_vm2 = vcmask 257024   ;;  %s282_s11 = smov [#allocation8]  }
  0x28   :  { %183 = vmatpush3.bf16.msra.mxu0 %v197_v1  ;;  %v174_v12 = vld [vmem:[%s358_s2] ss:$0 sm:$0xff]  ;;  %s157_s12 = sshll.u32 %s282_s11, 4  ;;  %s158_s12 = int_to_ptr.vmem [resolvable:$true] %s157_s12 }
  0x29   :  { %184 = vmatprep.subr.bf16.mxu0 %v280_v0  ;;  %s248_s13 = scalar_lea.vmem %s158_s12, 128  ;;  %p253_p3 = scmp.lt.s32.totalorder %s158_s12, %s158_s12 }
  0x2a   :  { %p249_p2 = scmp.ne.s32.totalorder %s158_s12, %s248_s13  ;;  %p254_p4 = scmp.lt.s32.totalorder %s248_s13, %s248_s13 }
  0x2c   :  { %185 = vmatpush3.bf16.msra.mxu0 %v198_v2  ;;  %p255_p5 = por %p254_p4, %p253_p3 }
  0x2e   :  { %v51_v4 = vld [vmem:[#allocation2] sm:$0xff]  ;;  %v52_v6 = vld [vmem:[#allocation2 + $0x8] sm:$0xff]  ;;  %p256_p6 = pnand %p255_p5, %p249_p2 }
  0x2f   :  { %187 = vmatmul.mubr.msk.bf16.vlgmr.msra.gmra.mrb[0].mxu0 %vm48_vm0, %v199_v3 }
 0x102   :  { %v114_v5 = vpop.f32.mrb[0].mxu0 }
 0x103   :  { %v121_v7 = vadd.f32 %v114_v5, %v51_v4  ;;  %v188_v8 = vpop.f32.mrb[1].mxu0 }
 0x104   :  { %v117_v9 = vpop.f32.mrb[2].mxu0 }
 0x105   :  { %123 = vst.msk [vmem:[#allocation2] sm:$0xff] %vm48_vm0, %v121_v7  ;;  %v122_v10 = vadd.f32 %v117_v9, %v52_v6  ;;  %v189_v11 = vpop.f32.mrb[3].mxu0 }
 0x107   :  { %124 = vst.msk [vmem:[#allocation2 + $0x8] sm:$0xff] %vm48_vm0, %v122_v10 }
 0x10c   :  { %v128_v13 = vld [vmem:[#allocation2] sm:$0xff] }
 0x10d   :  { %v137_v14 = vadd.f32 %v174_v12, %v128_v13 }
 0x10e   :  { %v129_v15 = vld [vmem:[#allocation2 + $0x8] sm:$0xff] }
 0x10f   :  { %v138_v16 = vadd.f32 %v174_v12, %v129_v15  ;;  %200 = vtanh.f32 %v137_v14 }
 0x111   :  { %202 = vtanh.f32 %v138_v16 }
 0x119   :  { %v201_v17 = vpop.eup %200 }
 0x11a   :  { %v177_v18 = vpack.c.bf16 %v201_v17, %v201_v17 }
 0x11b   :  { %v203_v19 = vpop.eup %202 }
 0x11c   :  { %v178_v20 = vpack.c.bf16 %v203_v19, %v203_v19  ;;  %150 = vst.msk [vmem:[#allocation8] sm:$0xf] %vm149_vm2, %v177_v18 }
 0x11e   :  { %151 = vst.msk [vmem:[#allocation8 + $0x4] sm:$0xf] %vm149_vm2, %v178_v20 }
 0x11f   :  { %259 = shalt.err (!%p256_p6)
}
 0x120   :  { %s260_s15 = scalar_lea.hbm %s359_s3, 128 }
 0x121   :  { %p261_p7 = scmp.ne.s32.totalorder %s359_s3, %s260_s15  ;;  %p264_p8 = scmp.lt.u32.totalorder %s260_s15, %s359_s3 }
 0x123   :  { %p266_p9 = pnand %p264_p8, %p261_p7 }
 0x125   :  { %269 = shalt.err (!%p266_p9)
}
 0x126   :  { %163 = dma.vmem_to_hbm [thread:$0]  %s158_s12, 128, %s359_s3, [#allocation5], %s277_s22, %s277_s22, %s278_s23  }
 0x127   :  { %274 = dma.done.wait [#allocation5], 128  }
 0x128   :  { %275 = vsyncadd [#allocation5], 4294967168 }
 0x129   :  { %167 = vsyncpa [#allocation4], 1 }
 0x12a   :  { %168 = vsyncpa [#allocation7], 1 }
 0x12b   :  { %169 = vsyncpa [#allocation5], 1 }

</bundles_post_ra>
